<compile_context>
chip_gen: v5e
topology: v5e:2x2
jax: 0.10.0
libtpu: 0.0.40
codegen_flags: <defaults>
</compile_context>

<pallas_src>
import jax
import jax.numpy as jnp
from jax import lax
from jax.experimental import pallas as pl
from jax.experimental.pallas import tpu as pltpu


def _round_up(x: int, m: int) -> int:
    return ((x + m - 1) // m) * m


# ----------------------------------------------------------------------------
# Path 1: VMEM-resident tables, batch-on-lanes one-hot MXU gather.
# ----------------------------------------------------------------------------
def _mf_onehot_kernel(uids_ref, iids_ref, utabT_ref, itabT_ref, out_ref):
    """One grid step: TB dot scores.

    uids_ref / iids_ref : (1, TB)        int32, ids on the lane axis
    utabT_ref / itabT_ref : (Dp, NuP)/(Dp, NiP) f32, transposed resident tables
    out_ref             : (1, TB)        f32, lane-dense score row
    """
    ids_u = uids_ref[...]                       # (1, TB)
    ids_i = iids_ref[...]                       # (1, TB)
    utabT = utabT_ref[...]                      # (Dp, NuP)
    itabT = itabT_ref[...]                      # (Dp, NiP)
    nu = utabT.shape[1]
    ni = itabT.shape[1]
    tb = ids_u.shape[1]

    # One-hot with table rows on sublanes, batch on lanes. Ids never leave the
    # lane axis, so no transpose/permute is needed for the compare.
    oh_u = (lax.broadcasted_iota(jnp.int32, (nu, tb), 0) == ids_u).astype(jnp.float32)
    oh_i = (lax.broadcasted_iota(jnp.int32, (ni, tb), 0) == ids_i).astype(jnp.float32)

    # Exact row selection as MXU matmul: (Dp, N) @ (N, TB) -> (Dp, TB).
    uembT = jnp.dot(utabT, oh_u, preferred_element_type=jnp.float32)
    iembT = jnp.dot(itabT, oh_i, preferred_element_type=jnp.float32)

    # Elementwise product + sublane reduce -> already lane-dense (1, TB).
    out_ref[...] = jnp.sum(uembT * iembT, axis=0, keepdims=True)


# ----------------------------------------------------------------------------
# Path 2: rows gathered in the wrapper (jnp.take); kernel = multiply-reduce.
# ----------------------------------------------------------------------------
def _mf_dot_kernel(uembT_ref, iembT_ref, out_ref):
    """uembT_ref/iembT_ref: (Dp, TB) f32 tiles; out_ref: (1, TB) f32."""
    out_ref[...] = jnp.sum(uembT_ref[...] * iembT_ref[...], axis=0, keepdims=True)


def mf_forward(uids, iids, user_emb, item_emb, *, block_b: int = 512,
               force_gather_fallback: bool = False):
    """Pallas MF forward: returns (B,) float32 dot scores (torch semantics)."""
    B = int(uids.shape[0])
    n_user, D = user_emb.shape
    n_item, D2 = item_emb.shape
    assert D == D2, "user/item embedding dims must match"

    # Batch tile: multiple of 128 (lane-dense, unmasked stores), capped.
    tb = min(_round_up(block_b, 128), _round_up(max(B, 1), 128))
    b_pad = _round_up(B, tb)
    num_tiles = pl.cdiv(b_pad, tb)

    # Only sublane padding for D (D=32 -> 32, not 128), lane padding for N.
    dp = _round_up(D, 8)
    nu_pad = _round_up(n_user, 128)
    ni_pad = _round_up(n_item, 128)

    # "parallel" only pays off with >= 2 batch tiles; with one tile it just
    # duplicates table residency/DMA on v7x's two TensorCores.
    sems = ("parallel",) if num_tiles >= 2 else ("arbitrary",)

    # Resident-path VMEM estimate: double-buffered transposed tables (Pallas
    # default buffering) + both one-hot intermediates + emb/id/out working set.
    table_bytes = (nu_pad + ni_pad) * dp * 4
    est_resident = (2 * table_bytes                       # tables, 2 buffers
                    + (nu_pad + ni_pad) * tb * 4          # one-hot intermediates
                    + 4 * dp * tb * 4                     # embT temporaries
                    + 8 * tb * 4)                         # ids + out blocks
    RESIDENT_VMEM_BUDGET = 40 * 2**20    # headroom under v7x's 64 MiB/TC

    use_resident = (not force_gather_fallback) and est_resident <= RESIDENT_VMEM_BUDGET

    if use_resident:
        # Transposed, padded tables: zero-padded D rows contribute 0 to the
        # dot; padded N columns are never selected (ids < N).
        utabT = jnp.pad(user_emb.astype(jnp.float32).T,
                        ((0, dp - D), (0, nu_pad - n_user)))
        itabT = jnp.pad(item_emb.astype(jnp.float32).T,
                        ((0, dp - D), (0, ni_pad - n_item)))
        # Lane-dense ids; pad lanes select row 0 and are sliced off at the end.
        uids2d = jnp.pad(uids.astype(jnp.int32), (0, b_pad - B)).reshape(1, b_pad)
        iids2d = jnp.pad(iids.astype(jnp.int32), (0, b_pad - B)).reshape(1, b_pad)

        cost = pl.CostEstimate(
            flops=2 * b_pad * (nu_pad + ni_pad) * dp + 3 * b_pad * dp,
            transcendentals=0,
            bytes_accessed=table_bytes + 2 * b_pad * 4 + b_pad * 4,
        )
        out = pl.pallas_call(
            _mf_onehot_kernel,
            grid=(num_tiles,),
            in_specs=[
                pl.BlockSpec((1, tb), lambda t: (0, t)),             # uids tile
                pl.BlockSpec((1, tb), lambda t: (0, t)),             # iids tile
                pl.BlockSpec((dp, nu_pad), lambda t: (0, 0)),        # user table (resident)
                pl.BlockSpec((dp, ni_pad), lambda t: (0, 0)),        # item table (resident)
            ],
            out_specs=pl.BlockSpec((1, tb), lambda t: (0, t)),
            out_shape=jax.ShapeDtypeStruct((1, b_pad), jnp.float32),
            compiler_params=pltpu.CompilerParams(
                dimension_semantics=sems,
                # v5e scoped default is 16 MiB; raise explicitly, stay < 64 MiB
                # (v7x physical per-TC).
                vmem_limit_bytes=int(min(48 * 2**20, est_resident + (8 << 20))),
            ),
            cost_estimate=cost,
        )(uids2d, iids2d, utabT, itabT)
        return out[0, :B]

    # ---- Gather fallback: O(B*D) HBM traffic regardless of table size. ----
    uembT = jnp.take(user_emb.astype(jnp.float32), uids.astype(jnp.int32), axis=0).T
    iembT = jnp.take(item_emb.astype(jnp.float32), iids.astype(jnp.int32), axis=0).T
    uembT = jnp.pad(uembT, ((0, dp - D), (0, b_pad - B)))   # (Dp, B_pad)
    iembT = jnp.pad(iembT, ((0, dp - D), (0, b_pad - B)))

    cost = pl.CostEstimate(
        flops=3 * b_pad * dp,
        transcendentals=0,
        bytes_accessed=2 * b_pad * dp * 4 + b_pad * 4,
    )
    out = pl.pallas_call(
        _mf_dot_kernel,
        grid=(num_tiles,),
        in_specs=[pl.BlockSpec((dp, tb), lambda t: (0, t)),
                  pl.BlockSpec((dp, tb), lambda t: (0, t))],
        out_specs=pl.BlockSpec((1, tb), lambda t: (0, t)),
        out_shape=jax.ShapeDtypeStruct((1, b_pad), jnp.float32),
        compiler_params=pltpu.CompilerParams(dimension_semantics=sems),
        cost_estimate=cost,
    )(uembT, iembT)
    return out[0, :B]


if __name__ == "__main__":
    # Small shapes consistent with MF(userN, itemN, dim=32).
    userN, itemN, dim, B = 64, 100, 32, 8

    key = jax.random.PRNGKey(0)
    k_u, k_i, k_uid, k_iid = jax.random.split(key, 4)

    # Deterministic parameter init (nn.Embedding default: N(0, 1)), float32.
    user_emb = jax.random.normal(k_u, (userN, dim), dtype=jnp.float32)
    item_emb = jax.random.normal(k_i, (itemN, dim), dtype=jnp.float32)

    uids = jax.random.randint(k_uid, (B,), 0, userN, dtype=jnp.int32)
    iids = jax.random.randint(k_iid, (B,), 0, itemN, dtype=jnp.int32)

    # Pure-JAX reference of the torch semantics.
    ref = jnp.sum(user_emb[uids] * item_emb[iids], axis=1)

    # Resident-table path (small tables; what this demo exercises by default).
    out_res = jax.block_until_ready(mf_forward(uids, iids, user_emb, item_emb))
    assert out_res.shape == (B,), out_res.shape
    assert jnp.allclose(out_res, ref, atol=1e-5, rtol=1e-5), (out_res, ref)

    # Gather-fallback path (what large tables would take) — verify it too.
    out_gat = jax.block_until_ready(
        mf_forward(uids, iids, user_emb, item_emb, force_gather_fallback=True))
    assert out_gat.shape == (B,), out_gat.shape
    assert jnp.allclose(out_gat, ref, atol=1e-5, rtol=1e-5), (out_gat, ref)

    print("KERNEL_OK")
</pallas_src>

<mosaic_0001>
module attributes {stable_mosaic.version = 11 : i64} {
  func.func @_mf_onehot_kernel(%arg0: i32, %arg1: memref<1x128xi32, #tpu.memory_space<vmem>>, %arg2: memref<1x128xi32, #tpu.memory_space<vmem>>, %arg3: memref<32x128xf32, #tpu.memory_space<vmem>>, %arg4: memref<32x128xf32, #tpu.memory_space<vmem>>, %arg5: memref<1x128xf32, #tpu.memory_space<vmem>>) attributes {dimension_semantics = [#tpu.dimension_semantics<arbitrary>], iteration_bounds = array<i64: 1>, scalar_prefetch = 0 : i64, scratch_operands = 0 : i64, tpu.core_type = #tpu.core_type<tc>, window_params = [{transform_indices = @transform_0, window_bounds = array<i64: 1, 128>}, {transform_indices = @transform_1, window_bounds = array<i64: 1, 128>}, {pipeline_mode = #tpu.pipeline_mode<synchronous>, transform_indices = @transform_2, window_bounds = array<i64: 32, 128>}, {pipeline_mode = #tpu.pipeline_mode<synchronous>, transform_indices = @transform_3, window_bounds = array<i64: 32, 128>}, {transform_indices = @transform_4, window_bounds = array<i64: 1, 128>}]} {
    %c0 = arith.constant 0 : index
    %c0_0 = arith.constant 0 : index
    %0 = vector.load %arg1[%c0, %c0_0] : memref<1x128xi32, #tpu.memory_space<vmem>>, vector<1x128xi32>
    %c0_1 = arith.constant 0 : index
    %c0_2 = arith.constant 0 : index
    %1 = vector.load %arg2[%c0_1, %c0_2] : memref<1x128xi32, #tpu.memory_space<vmem>>, vector<1x128xi32>
    %c0_3 = arith.constant 0 : index
    %c0_4 = arith.constant 0 : index
    %2 = vector.load %arg3[%c0_3, %c0_4] : memref<32x128xf32, #tpu.memory_space<vmem>>, vector<32x128xf32>
    %c0_5 = arith.constant 0 : index
    %c0_6 = arith.constant 0 : index
    %3 = vector.load %arg4[%c0_5, %c0_6] : memref<32x128xf32, #tpu.memory_space<vmem>>, vector<32x128xf32>
    %4 = tpu.iota {dimensions = array<i32: 0>} : vector<128x128xi32>
    %5 = vector.broadcast %0 : vector<1x128xi32> to vector<128x128xi32>
    %6 = arith.cmpi eq, %4, %5 : vector<128x128xi32>
    %7 = arith.extui %6 : vector<128x128xi1> to vector<128x128xi32>
    %8 = arith.sitofp %7 : vector<128x128xi32> to vector<128x128xf32>
    %9 = tpu.iota {dimensions = array<i32: 0>} : vector<128x128xi32>
    %10 = vector.broadcast %1 : vector<1x128xi32> to vector<128x128xi32>
    %11 = arith.cmpi eq, %9, %10 : vector<128x128xi32>
    %12 = arith.extui %11 : vector<128x128xi1> to vector<128x128xi32>
    %13 = arith.sitofp %12 : vector<128x128xi32> to vector<128x128xf32>
    %cst = arith.constant dense<0.000000e+00> : vector<32x128xf32>
    %14 = tpu.matmul %2, %8, %cst {dimension_numbers = #tpu.dot_dimension_numbers<[1], [0], [0], [1], [0, 0, 1, 1], [], []>} : vector<32x128xf32>, vector<128x128xf32>, vector<32x128xf32> -> vector<32x128xf32>
    %cst_7 = arith.constant dense<0.000000e+00> : vector<32x128xf32>
    %15 = tpu.matmul %3, %13, %cst_7 {dimension_numbers = #tpu.dot_dimension_numbers<[1], [0], [0], [1], [0, 0, 1, 1], [], []>} : vector<32x128xf32>, vector<128x128xf32>, vector<32x128xf32> -> vector<32x128xf32>
    %16 = arith.mulf %14, %15 : vector<32x128xf32>
    %cst_8 = arith.constant dense<0.000000e+00> : vector<128xf32>
    %17 = vector.multi_reduction <add>, %16, %cst_8 [0] : vector<32x128xf32> to vector<128xf32>
    %18 = vector.shape_cast %17 : vector<128xf32> to vector<1x128xf32>
    %c0_9 = arith.constant 0 : index
    %c0_10 = arith.constant 0 : index
    %19 = vector.load %arg5[%c0_9, %c0_10] : memref<1x128xf32, #tpu.memory_space<vmem>>, vector<1x128xf32>
    tpu.vector_store %arg5[%c0_9, %c0_10], %18 {strides = array<i32>} : memref<1x128xf32, #tpu.memory_space<vmem>>, vector<1x128xf32>,
    return
  }
  func.func @transform_0(%arg0: i32) -> (i32, i32) {
    %c0_i32 = arith.constant 0 : i32
    %c0_i32_0 = arith.constant 0 : i32
    return %c0_i32, %arg0 : i32, i32
  }
  func.func @transform_1(%arg0: i32) -> (i32, i32) {
    %c0_i32 = arith.constant 0 : i32
    %c0_i32_0 = arith.constant 0 : i32
    return %c0_i32, %arg0 : i32, i32
  }
  func.func @transform_2(%arg0: i32) -> (i32, i32) {
    %c0_i32 = arith.constant 0 : i32
    %c0_i32_0 = arith.constant 0 : i32
    %c0_i32_1 = arith.constant 0 : i32
    return %c0_i32, %c0_i32_0 : i32, i32
  }
  func.func @transform_3(%arg0: i32) -> (i32, i32) {
    %c0_i32 = arith.constant 0 : i32
    %c0_i32_0 = arith.constant 0 : i32
    %c0_i32_1 = arith.constant 0 : i32
    return %c0_i32, %c0_i32_0 : i32, i32
  }
  func.func @transform_4(%arg0: i32) -> (i32, i32) {
    %c0_i32 = arith.constant 0 : i32
    %c0_i32_0 = arith.constant 0 : i32
    return %c0_i32, %arg0 : i32, i32
  }
}

</mosaic_0001>

<bundles_post_ra>
// kernel: tpu_custom_call.1
= control target key start
LH: loop header
LB: loop body
LE: loop exit
PB: predicated region body
PF: predicated region fallthrough
CT: control target
= control target key end

     0   :  { %9 = vsyncpa [#allocation3], 0  ;;  %s694_s0 = inlined_call_operand.hbm [shape: s32[1,128], index: 0, kind: input, shape index: {}]   ;;  %s695_s1 = inlined_call_operand.hbm [shape: s32[1,128], index: 1, kind: input, shape index: {}]   ;;  %s696_s2 = inlined_call_operand.hbm [shape: f32[32,128], index: 2, kind: input, shape index: {}]   ;;  %s697_s3 = inlined_call_operand.hbm [shape: f32[32,128], index: 3, kind: input, shape index: {}]   ;;  %s698_s4 = inlined_call_operand.hbm [shape: f32[1,128], index: 4, kind: output, shape index: {}]  }
   0x1   :  { %10 = vsyncpa [#allocation6], 0 }
   0x2   :  { %11 = vsyncpa [#allocation9], 0  ;;  %s29_s17 = sshll.u32 %s695_s1, 4  ;;  %s30_s17 = int_to_ptr.hbm [resolvable:$true] %s29_s17 }
   0x3   :  { %12 = vsyncpa [#allocation4], 0  ;;  %s527_s18 = smov [#allocation5]   ;;  %s18_s22 = sshll.u32 %s694_s0, 4  ;;  %s19_s22 = int_to_ptr.hbm [resolvable:$true] %s18_s22 }
   0x4   :  { %s31_s19 = sshll.u32 %s527_s18, 4  ;;  %s528_s23 = smov [#allocation2]   ;;  %s32_s19 = int_to_ptr.vmem [resolvable:$true] %s31_s19 }
   0x5   :  { %34 = dma.hbm_to_vmem [thread:$0]  %s30_s17, 16, %s32_s19, [#allocation6]  }
   0x6   :  { %s20_s24 = sshll.u32 %s528_s23, 4  ;;  %s39_s27 = sshll.u32 %s696_s2, 4  ;;  %s21_s24 = int_to_ptr.vmem [resolvable:$true] %s20_s24  ;;  %s40_s27 = int_to_ptr.hbm [resolvable:$true] %s39_s27 }
   0x7   :  { %23 = dma.hbm_to_vmem [thread:$0]  %s19_s22, 16, %s21_s24, [#allocation3]  }
   0x8   :  { %s529_s1 = smov [#allocation7]   ;;  %s52_s5 = sshll.u32 %s697_s3, 4  ;;  %s53_s5 = int_to_ptr.hbm [resolvable:$true] %s52_s5 }
   0x9   :  { %s41_s28 = sshll.u32 %s529_s1, 4  ;;  %s530_s6 = smov 128   ;;  %s42_s28 = int_to_ptr.vmem [resolvable:$true] %s41_s28 }
   0xa   :  { %s531_s0 = smov 8   ;;  %s532_s7 = smov [#allocation8]  }
   0xb   :  { %47 = dma.hbm_to_vmem [thread:$0]  %s40_s27, 512, %s42_s28, [#allocation6], %s530_s6, %s530_s6, %s531_s0  }
   0xc   :  { %s54_s8 = sshll.u32 %s532_s7, 4  ;;  %s55_s8 = int_to_ptr.vmem [resolvable:$true] %s54_s8 }
   0xd   :  { %60 = dma.hbm_to_vmem [thread:$0]  %s53_s5, 512, %s55_s8, [#allocation9], %s530_s6, %s530_s6, %s531_s0  }
   0xe   :  { %519 = dma.done.wait [#allocation3], 16  }
   0xf   :  { %520 = vsyncadd [#allocation3], 4294967280 }
  0x10   :  { %521 = dma.done.wait [#allocation6], 528  }
  0x11   :  { %522 = vsyncadd [#allocation6], 4294966768 }
  0x12   :  { %523 = dma.done.wait [#allocation9], 512  }
  0x13   :  { %524 = vsyncadd [#allocation9], 4294966784  ;;  %v87_v0 = vlaneseq  ;;  %v577_v5 = vld [vmem:[#allocation2] ss:$0 sm:$0xff]  ;;  %v579_v6 = vld [vmem:[#allocation5] ss:$0 sm:$0xff] }
  0x14   :  { %v533_v8 = vmov 1.0   ;;  %v79_v20 = vld [vmem:[#allocation7] sm:$0xff]  ;;  %v81_v21 = vld [vmem:[#allocation7 + $0x10] sm:$0xff]  ;;  %v80_v24 = vld [vmem:[#allocation7 + $0x8] sm:$0xff]  ;;  %s534_s2 = smov [#allocation10]   ;;  %s281_s11 = sshll.u32 %s698_s4, 4  ;;  %s282_s11 = int_to_ptr.hbm [resolvable:$true] %s281_s11 }
  0x15   :  { %v572_v1 = vshrl.u32 %v87_v0, 7  ;;  %v83_v22 = vld [vmem:[#allocation8] sm:$0xff]  ;;  %v85_v23 = vld [vmem:[#allocation8 + $0x10] sm:$0xff]  ;;  %v82_v25 = vld [vmem:[#allocation7 + $0x18] sm:$0xff]  ;;  %s279_s3 = sshll.u32 %s534_s2, 4  ;;  %s280_s3 = int_to_ptr.vmem [resolvable:$true] %s279_s3 }
  0x16   :  { %v84_v26 = vld [vmem:[#allocation8 + $0x8] sm:$0xff]  ;;  %v86_v27 = vld [vmem:[#allocation8 + $0x18] sm:$0xff] }
  0x17   :  { %v103_v2 = vadd.s32 120, %v572_v1  ;;  %v102_v3 = vadd.s32 112, %v572_v1  ;;  %v101_v4 = vadd.s32 104, %v572_v1  ;;  %v100_v7 = vadd.s32 96, %v572_v1 }
  0x18   :  { %v99_v9 = vadd.s32 88, %v572_v1  ;;  %v98_v10 = vadd.s32 80, %v572_v1  ;;  %v97_v11 = vadd.s32 72, %v572_v1  ;;  %v96_v12 = vadd.s32 64, %v572_v1 }
  0x19   :  { %vm120_vm0 = vcmp.eq.s32.totalorder %v103_v2, %v577_v5  ;;  %vm119_vm1 = vcmp.eq.s32.totalorder %v102_v3, %v577_v5  ;;  %vm169_vm2 = vcmp.eq.s32.totalorder %v103_v2, %v579_v6  ;;  %vm168_vm3 = vcmp.eq.s32.totalorder %v102_v3, %v579_v6 }
  0x1a   :  { %325 = vmatpush.msk.msra.mxu0 %vm120_vm0, %v533_v8  ;;  %357 = vmatpush.msk.msra.mxu2 %vm120_vm0, %v533_v8  ;;  %vm118_vm4 = vcmp.eq.s32.totalorder %v101_v4, %v577_v5  ;;  %vm167_vm5 = vcmp.eq.s32.totalorder %v101_v4, %v579_v6  ;;  %vm117_vm6 = vcmp.eq.s32.totalorder %v100_v7, %v577_v5  ;;  %v95_v13 = vadd.s32 56, %v572_v1 }
  0x1b   :  { %341 = vmatpush.msk.msra.mxu1 %vm169_vm2, %v533_v8  ;;  %373 = vmatpush.msk.msra.mxu3 %vm169_vm2, %v533_v8  ;;  %vm166_vm7 = vcmp.eq.s32.totalorder %v100_v7, %v579_v6  ;;  %vm116_vm8 = vcmp.eq.s32.totalorder %v99_v9, %v577_v5  ;;  %vm165_vm9 = vcmp.eq.s32.totalorder %v99_v9, %v579_v6  ;;  %v94_v14 = vadd.s32 48, %v572_v1 }
  0x1c   :  { %326 = vmatpush.msk.msra.mxu0 %vm119_vm1, %v533_v8  ;;  %358 = vmatpush.msk.msra.mxu2 %vm119_vm1, %v533_v8  ;;  %vm115_vm10 = vcmp.eq.s32.totalorder %v98_v10, %v577_v5  ;;  %vm164_vm11 = vcmp.eq.s32.totalorder %v98_v10, %v579_v6  ;;  %vm114_vm12 = vcmp.eq.s32.totalorder %v97_v11, %v577_v5  ;;  %v93_v15 = vadd.s32 40, %v572_v1 }
  0x1d   :  { %342 = vmatpush.msk.msra.mxu1 %vm168_vm3, %v533_v8  ;;  %374 = vmatpush.msk.msra.mxu3 %vm168_vm3, %v533_v8  ;;  %vm163_vm13 = vcmp.eq.s32.totalorder %v97_v11, %v579_v6  ;;  %vm113_vm14 = vcmp.eq.s32.totalorder %v96_v12, %v577_v5  ;;  %vm162_vm15 = vcmp.eq.s32.totalorder %v96_v12, %v579_v6  ;;  %v92_v16 = vadd.s32 32, %v572_v1 }
  0x1e   :  { %327 = vmatpush.msk.msra.mxu0 %vm118_vm4, %v533_v8  ;;  %359 = vmatpush.msk.msra.mxu2 %vm118_vm4, %v533_v8  ;;  %vm112_vm0 = vcmp.eq.s32.totalorder %v95_v13, %v577_v5  ;;  %vm161_vm1 = vcmp.eq.s32.totalorder %v95_v13, %v579_v6  ;;  %vm111_vm2 = vcmp.eq.s32.totalorder %v94_v14, %v577_v5  ;;  %v91_v17 = vadd.s32 24, %v572_v1 }
  0x1f   :  { %343 = vmatpush.msk.msra.mxu1 %vm167_vm5, %v533_v8  ;;  %375 = vmatpush.msk.msra.mxu3 %vm167_vm5, %v533_v8  ;;  %vm160_vm3 = vcmp.eq.s32.totalorder %v94_v14, %v579_v6  ;;  %vm110_vm4 = vcmp.eq.s32.totalorder %v93_v15, %v577_v5  ;;  %vm159_vm5 = vcmp.eq.s32.totalorder %v93_v15, %v579_v6  ;;  %v90_v18 = vadd.s32 16, %v572_v1 }
  0x20   :  { %328 = vmatpush.msk.msra.mxu0 %vm117_vm6, %v533_v8  ;;  %360 = vmatpush.msk.msra.mxu2 %vm117_vm6, %v533_v8  ;;  %vm109_vm6 = vcmp.eq.s32.totalorder %v92_v16, %v577_v5  ;;  %v89_v19 = vadd.s32 8, %v572_v1 }
  0x21   :  { %344 = vmatpush.msk.msra.mxu1 %vm166_vm7, %v533_v8  ;;  %376 = vmatpush.msk.msra.mxu3 %vm166_vm7, %v533_v8  ;;  %vm158_vm7 = vcmp.eq.s32.totalorder %v92_v16, %v579_v6 }
  0x22   :  { %329 = vmatpush.msk.msra.mxu0 %vm116_vm8, %v533_v8  ;;  %361 = vmatpush.msk.msra.mxu2 %vm116_vm8, %v533_v8  ;;  %vm108_vm8 = vcmp.eq.s32.totalorder %v91_v17, %v577_v5 }
  0x23   :  { %345 = vmatpush.msk.msra.mxu1 %vm165_vm9, %v533_v8  ;;  %377 = vmatpush.msk.msra.mxu3 %vm165_vm9, %v533_v8  ;;  %vm157_vm9 = vcmp.eq.s32.totalorder %v91_v17, %v579_v6 }
  0x24   :  { %330 = vmatpush.msk.msra.mxu0 %vm115_vm10, %v533_v8  ;;  %362 = vmatpush.msk.msra.mxu2 %vm115_vm10, %v533_v8  ;;  %vm107_vm10 = vcmp.eq.s32.totalorder %v90_v18, %v577_v5 }
  0x25   :  { %346 = vmatpush.msk.msra.mxu1 %vm164_vm11, %v533_v8  ;;  %378 = vmatpush.msk.msra.mxu3 %vm164_vm11, %v533_v8  ;;  %vm156_vm11 = vcmp.eq.s32.totalorder %v90_v18, %v579_v6 }
  0x26   :  { %331 = vmatpush.msk.msra.mxu0 %vm114_vm12, %v533_v8  ;;  %363 = vmatpush.msk.msra.mxu2 %vm114_vm12, %v533_v8  ;;  %vm106_vm12 = vcmp.eq.s32.totalorder %v89_v19, %v577_v5 }
  0x27   :  { %347 = vmatpush.msk.msra.mxu1 %vm163_vm13, %v533_v8  ;;  %379 = vmatpush.msk.msra.mxu3 %vm163_vm13, %v533_v8  ;;  %vm155_vm13 = vcmp.eq.s32.totalorder %v89_v19, %v579_v6 }
  0x28   :  { %332 = vmatpush.msk.msra.mxu0 %vm113_vm14, %v533_v8  ;;  %364 = vmatpush.msk.msra.mxu2 %vm113_vm14, %v533_v8  ;;  %vm105_vm14 = vcmp.eq.s32.totalorder %v572_v1, %v577_v5 }
  0x29   :  { %348 = vmatpush.msk.msra.mxu1 %vm162_vm15, %v533_v8  ;;  %380 = vmatpush.msk.msra.mxu3 %vm162_vm15, %v533_v8  ;;  %vm154_vm15 = vcmp.eq.s32.totalorder %v572_v1, %v579_v6 }
  0x2a   :  { %333 = vmatpush.msk.msra.mxu0 %vm112_vm0, %v533_v8  ;;  %365 = vmatpush.msk.msra.mxu2 %vm112_vm0, %v533_v8 }
  0x2b   :  { %349 = vmatpush.msk.msra.mxu1 %vm161_vm1, %v533_v8  ;;  %381 = vmatpush.msk.msra.mxu3 %vm161_vm1, %v533_v8 }
  0x2c   :  { %334 = vmatpush.msk.msra.mxu0 %vm111_vm2, %v533_v8  ;;  %366 = vmatpush.msk.msra.mxu2 %vm111_vm2, %v533_v8 }
  0x2d   :  { %350 = vmatpush.msk.msra.mxu1 %vm160_vm3, %v533_v8  ;;  %382 = vmatpush.msk.msra.mxu3 %vm160_vm3, %v533_v8 }
  0x2e   :  { %335 = vmatpush.msk.msra.mxu0 %vm110_vm4, %v533_v8  ;;  %367 = vmatpush.msk.msra.mxu2 %vm110_vm4, %v533_v8 }
  0x2f   :  { %351 = vmatpush.msk.msra.mxu1 %vm159_vm5, %v533_v8  ;;  %383 = vmatpush.msk.msra.mxu3 %vm159_vm5, %v533_v8 }
  0x30   :  { %336 = vmatpush.msk.msra.mxu0 %vm109_vm6, %v533_v8  ;;  %368 = vmatpush.msk.msra.mxu2 %vm109_vm6, %v533_v8 }
  0x31   :  { %352 = vmatpush.msk.msra.mxu1 %vm158_vm7, %v533_v8  ;;  %384 = vmatpush.msk.msra.mxu3 %vm158_vm7, %v533_v8 }
  0x32   :  { %337 = vmatpush.msk.msra.mxu0 %vm108_vm8, %v533_v8  ;;  %369 = vmatpush.msk.msra.mxu2 %vm108_vm8, %v533_v8 }
  0x33   :  { %353 = vmatpush.msk.msra.mxu1 %vm157_vm9, %v533_v8  ;;  %385 = vmatpush.msk.msra.mxu3 %vm157_vm9, %v533_v8 }
  0x34   :  { %338 = vmatpush.msk.msra.mxu0 %vm107_vm10, %v533_v8  ;;  %370 = vmatpush.msk.msra.mxu2 %vm107_vm10, %v533_v8 }
  0x35   :  { %354 = vmatpush.msk.msra.mxu1 %vm156_vm11, %v533_v8  ;;  %386 = vmatpush.msk.msra.mxu3 %vm156_vm11, %v533_v8 }
  0x36   :  { %339 = vmatpush.msk.msra.mxu0 %vm106_vm12, %v533_v8  ;;  %371 = vmatpush.msk.msra.mxu2 %vm106_vm12, %v533_v8 }
  0x37   :  { %355 = vmatpush.msk.msra.mxu1 %vm155_vm13, %v533_v8  ;;  %387 = vmatpush.msk.msra.mxu3 %vm155_vm13, %v533_v8 }
  0x38   :  { %340 = vmatpush.msk.msra.mxu0 %vm105_vm14, %v533_v8  ;;  %372 = vmatpush.msk.msra.mxu2 %vm105_vm14, %v533_v8 }
  0x39   :  { %356 = vmatpush.msk.msra.mxu1 %vm154_vm15, %v533_v8  ;;  %388 = vmatpush.msk.msra.mxu3 %vm154_vm15, %v533_v8 }
  0x3a   :  { %218 = vmatmul.f32.vlgmr.msra.gmra.mxu0 %v79_v20  ;;  %224 = vmatmul.f32.vlgmr.msra.gmra.mxu2 %v81_v21 }
  0x3b   :  { %247 = vmatmul.f32.vlgmr.msra.gmra.mxu1 %v83_v22  ;;  %253 = vmatmul.f32.vlgmr.msra.gmra.mxu3 %v85_v23 }
  0x42   :  { %221 = vmatmul.f32.gmra.mxu0 %v80_v24  ;;  %227 = vmatmul.f32.gmra.mxu2 %v82_v25 }
  0x43   :  { %250 = vmatmul.f32.gmra.mxu1 %v84_v26  ;;  %256 = vmatmul.f32.gmra.mxu3 %v86_v27 }
  0xb7   :  { %v219_v28 = vpop.f32.mrf.mxu0 }
  0xb8   :  { %v248_v29 = vpop.f32.mrf.mxu1 }
  0xb9   :  { %v260_v34 = vmul.f32 %v248_v29, %v219_v28 }
  0xbd   :  { %v225_v30 = vpop.f32.mrf.mxu2 }
  0xbe   :  { %v254_v31 = vpop.f32.mrf.mxu3 }
  0xbf   :  { %v222_v32 = vpop.f32.mrf.mxu0  ;;  %v262_v37 = vmul.f32 %v254_v31, %v225_v30 }
  0xc0   :  { %v251_v33 = vpop.f32.mrf.mxu1 }
  0xc1   :  { %v261_v35 = vmul.f32 %v251_v33, %v222_v32 }
  0xc3   :  { %v264_v36 = vadd.f32 %v261_v35, %v260_v34 }
  0xc5   :  { %v228_v38 = vpop.f32.mrf.mxu2  ;;  %v265_v41 = vadd.f32 %v264_v36, %v262_v37 }
  0xc6   :  { %v257_v39 = vpop.f32.mrf.mxu3 }
  0xc7   :  { %v263_v40 = vmul.f32 %v257_v39, %v228_v38 }
  0xc9   :  { %v266_v42 = vadd.f32 %v265_v41, %v263_v40 }
  0xcb   :  { %v267_v43 = vrot.slane %v266_v42, 4 }
  0xcd   :  { %v268_v44 = vadd.f32 %v267_v43, %v266_v42 }
  0xcf   :  { %v269_v45 = vrot.slane %v268_v44, 2 }
  0xd1   :  { %v270_v46 = vadd.f32 %v269_v45, %v268_v44 }
  0xd3   :  { %v271_v47 = vrot.slane %v270_v46, 1 }
  0xd5   :  { %v272_v48 = vadd.f32 %v271_v47, %v270_v46 }
  0xd7   :  { %273 = vst [vmem:[#allocation10] sm:$0x1] %v272_v48 }
  0xd8   :  { %284 = dma.vmem_to_hbm [thread:$0]  %s280_s3, 16, %s282_s11, [#allocation4]  }
  0xd9   :  { %525 = dma.done.wait [#allocation4], 16  }
  0xda   :  { %526 = vsyncadd [#allocation4], 4294967280 }
  0xdb   :  { %289 = vsyncpa [#allocation3], 1 }
  0xdc   :  { %290 = vsyncpa [#allocation6], 1 }
  0xdd   :  { %291 = vsyncpa [#allocation9], 1 }
  0xde   :  { %292 = vsyncpa [#allocation4], 1 }

</bundles_post_ra>
